<compile_context>
chip_gen: v5e
topology: v5e:2x2
jax: 0.10.0
libtpu: 0.0.40
codegen_flags: <defaults>
</compile_context>

<pallas_src>
import functools

import jax
import jax.numpy as jnp
from jax import lax
from jax.experimental import pallas as pl
from jax.experimental.pallas import tpu as pltpu

_A = -0.75  # PyTorch's bicubic convolution coefficient


def _cubic_conv1(t, A=_A):
    # |t| <= 1
    return ((A + 2.0) * t - (A + 3.0)) * t * t + 1.0


def _cubic_conv2(t, A=_A):
    # 1 < |t| < 2
    return ((A * t - 5.0 * A) * t + 8.0 * A) * t - 4.0 * A


def _cubic_coeffs(t):
    # t = fractional offset in [0, 1); weights for taps at floor-1 .. floor+2
    return (
        _cubic_conv2(t + 1.0),
        _cubic_conv1(t),
        _cubic_conv1(1.0 - t),
        _cubic_conv2(2.0 - t),
    )


def _round_up(v, m):
    return (v + m - 1) // m * m


def _interp_kernel(x_ref, pos_ref, out_ref, *, Hx, Wx, C_pad, H, W):
    # x_ref:   (1, Hx, Wx*C_pad)  NHWC-flattened, channel-padded feature map
    # pos_ref: (1, TN, 2)         (x, y) pixel coordinates in the H x W image
    # out_ref: (1, TN, C_pad)
    xf = x_ref[0]                              # [Hx, Wx*C_pad], native dtype
    pos = pos_ref[0].astype(jnp.float32)       # [TN, 2]
    TN = pos.shape[0]

    px = pos[:, 0:1]                           # [TN, 1] x-coordinate (width)
    py = pos[:, 1:2]                           # [TN, 1] y-coordinate (height)

    # normgrid: 2 * pos / [W-1, H-1] - 1
    # NOTE: matches the original module; breaks if H == 1 or W == 1.
    gx = 2.0 * (px / (W - 1.0)) - 1.0
    gy = 2.0 * (py / (H - 1.0)) - 1.0

    # grid_sample unnormalize (align_corners=False) onto x's own spatial dims
    ix = ((gx + 1.0) * Wx - 1.0) * 0.5
    iy = ((gy + 1.0) * Hx - 1.0) * 0.5

    ix0f = jnp.floor(ix)
    iy0f = jnp.floor(iy)
    tx = ix - ix0f
    ty = iy - iy0f
    ix0 = ix0f.astype(jnp.int32)               # [TN, 1]
    iy0 = iy0f.astype(jnp.int32)               # [TN, 1]

    cx = _cubic_coeffs(tx)                     # 4 x [TN, 1]
    cy = _cubic_coeffs(ty)                     # 4 x [TN, 1]

    # Separable one-hot-weighted matrices (OOB taps -> weight 0 == zero pad).
    h_iota = lax.broadcasted_iota(jnp.int32, (1, Hx), 1)
    w_iota = lax.broadcasted_iota(jnp.int32, (1, Wx), 1)
    Ry = jnp.zeros((TN, Hx), jnp.float32)
    Cw = jnp.zeros((TN, Wx), jnp.float32)
    for j in range(4):
        Ry = Ry + jnp.where(h_iota == iy0 + (j - 1), cy[j], 0.0)
        Cw = Cw + jnp.where(w_iota == ix0 + (j - 1), cx[j], 0.0)

    # MXU: contract the H axis.  tmp[n, w*C_pad + c] = sum_h Ry[n,h]*x[h,w,c]
    tmp = lax.dot_general(
        Ry.astype(xf.dtype), xf,
        dimension_numbers=(((1,), (0,)), ((), ())),
        preferred_element_type=jnp.float32,
    )                                          # [TN, Wx*C_pad] fp32

    # VPU: contract the W axis with lane-block-aligned static slices.
    acc = jnp.zeros((TN, C_pad), jnp.float32)
    for w in range(Wx):
        acc = acc + Cw[:, w:w + 1] * tmp[:, w * C_pad:(w + 1) * C_pad]

    out_ref[0] = acc.astype(out_ref.dtype)


def interpolate_sparse2d(x, pos, H, W, *, tn_max=256):
    """Pallas implementation of InterpolateSparse2d(mode='bicubic').

    x:   [B, C, Hx, Wx] float feature map (NCHW)
    pos: [B, N, 2] (x, y) pixel coordinates within an H x W image
    Returns [B, N, C] with dtype of x.
    """
    B, C, Hx, Wx = x.shape
    _, N, _ = pos.shape

    C_pad = _round_up(C, 128)                  # lane-dense matmul RHS / output
    n8 = _round_up(max(N, 1), 8)
    TN = min(tn_max, n8)                       # TN <= 256 keeps v7x VMEM happy
    N_pad = _round_up(n8, TN)

    # NCHW -> NHWC (+ channel pad) so the matmul RHS is already [K, Wx*C_pad].
    x_nhwc = jnp.transpose(x, (0, 2, 3, 1))
    if C_pad != C:
        x_nhwc = jnp.pad(x_nhwc, ((0, 0), (0, 0), (0, 0), (0, C_pad - C)))
    x_flat = x_nhwc.reshape(B, Hx, Wx * C_pad)

    pos_p = pos.astype(jnp.float32)
    if N_pad != N:
        pos_p = jnp.pad(pos_p, ((0, 0), (0, N_pad - N), (0, 0)))

    kernel = functools.partial(_interp_kernel, Hx=Hx, Wx=Wx, C_pad=C_pad,
                               H=float(H), W=float(W))

    itemsize = x.dtype.itemsize
    x_block = Hx * Wx * C_pad * itemsize
    out_block = TN * C_pad * itemsize
    pos_block = TN * 2 * 4
    tmp_bytes = TN * Wx * C_pad * 4            # fp32 intermediate
    need = 2 * (x_block + out_block + pos_block) + 3 * tmp_bytes + (2 << 20)
    vmem_limit = int(min(max(need, 32 << 20), 64 << 20))

    flops = 2 * B * N_pad * Hx * Wx * C_pad + 2 * B * N_pad * Wx * C_pad
    bytes_accessed = (B * Hx * Wx * C_pad * itemsize
                      + B * N_pad * 2 * 4
                      + B * N_pad * C_pad * itemsize)

    out = pl.pallas_call(
        kernel,
        out_shape=jax.ShapeDtypeStruct((B, N_pad, C_pad), x.dtype),
        grid_spec=pltpu.PrefetchScalarGridSpec(
            num_scalar_prefetch=0,
            grid=(B, N_pad // TN),
            in_specs=[
                # Same block for every n-tile -> feature map stays VMEM-resident.
                pl.BlockSpec((1, Hx, Wx * C_pad), lambda b, n: (b, 0, 0)),
                pl.BlockSpec((1, TN, 2), lambda b, n: (b, n, 0)),
            ],
            out_specs=pl.BlockSpec((1, TN, C_pad), lambda b, n: (b, n, 0)),
        ),
        compiler_params=pltpu.CompilerParams(
            dimension_semantics=("parallel", "parallel"),
            vmem_limit_bytes=vmem_limit,
        ),
        cost_estimate=pl.CostEstimate(
            flops=flops, transcendentals=0, bytes_accessed=bytes_accessed),
    )(x_flat, pos_p)

    return out[:, :N, :C]


def _ref_interpolate_sparse2d(x, pos, H, W):
    """Pure-JAX reference (explicit 4x4 tap gather with zero padding)."""
    B, C, Hx, Wx = x.shape
    px = pos[..., 0]
    py = pos[..., 1]
    gx = 2.0 * px / (W - 1.0) - 1.0
    gy = 2.0 * py / (H - 1.0) - 1.0
    ix = ((gx + 1.0) * Wx - 1.0) / 2.0
    iy = ((gy + 1.0) * Hx - 1.0) / 2.0
    ix0f = jnp.floor(ix)
    iy0f = jnp.floor(iy)
    tx = ix - ix0f
    ty = iy - iy0f
    cx = _cubic_coeffs(tx)
    cy = _cubic_coeffs(ty)
    ix0 = ix0f.astype(jnp.int32)
    iy0 = iy0f.astype(jnp.int32)

    out = jnp.zeros((B, C, pos.shape[1]), jnp.float32)
    for j in range(4):
        for i in range(4):
            xi = ix0 - 1 + i
            yj = iy0 - 1 + j
            valid = (xi >= 0) & (xi < Wx) & (yj >= 0) & (yj < Hx)
            xi_c = jnp.clip(xi, 0, Wx - 1)
            yj_c = jnp.clip(yj, 0, Hx - 1)
            v = jax.vmap(lambda xb, yy, xx: xb[:, yy, xx])(x, yj_c, xi_c)  # [B,C,N]
            v = jnp.where(valid[:, None, :], v, 0.0)
            out = out + (cy[j] * cx[i])[:, None, :] * v
    return jnp.transpose(out, (0, 2, 1)).astype(x.dtype)  # [B, N, C]


if __name__ == "__main__":
    # Small shapes: feature map 2x4x16x16, 8 sparse keypoints in a 64x64 image.
    B, C, Hx, Wx = 2, 4, 16, 16
    N = 8
    H, W = 64, 64

    key = jax.random.PRNGKey(0)
    kx, kp = jax.random.split(key)
    x = jax.random.normal(kx, (B, C, Hx, Wx), dtype=jnp.float32)
    pos = jax.random.uniform(kp, (B, N, 2), dtype=jnp.float32,
                             minval=0.0, maxval=float(W - 1))

    out = interpolate_sparse2d(x, pos, H, W)
    out = jax.block_until_ready(out)

    ref = _ref_interpolate_sparse2d(x, pos, H, W)
    assert out.shape == (B, N, C), out.shape
    assert jnp.allclose(out, ref, atol=1e-4, rtol=1e-4), (
        float(jnp.max(jnp.abs(out - ref))))

    print("KERNEL_OK")
</pallas_src>

<mosaic_0001>
module attributes {stable_mosaic.version = 11 : i64} {
  func.func @_interp_kernel(%arg0: i32, %arg1: i32, %arg2: memref<1x16x2048xf32, #tpu.memory_space<vmem>>, %arg3: memref<1x8x2xf32, #tpu.memory_space<vmem>>, %arg4: memref<1x8x128xf32, #tpu.memory_space<vmem>>) attributes {dimension_semantics = [#tpu.dimension_semantics<parallel>, #tpu.dimension_semantics<parallel>], iteration_bounds = array<i64: 2, 1>, scalar_prefetch = 0 : i64, scratch_operands = 0 : i64, tpu.core_type = #tpu.core_type<tc>, window_params = [{transform_indices = @transform_0, window_bounds = array<i64: 1, 16, 2048>}, {transform_indices = @transform_1, window_bounds = array<i64: 1, 8, 2>}, {transform_indices = @transform_2, window_bounds = array<i64: 1, 8, 128>}]} {
    %c0 = arith.constant 0 : index
    %c0_0 = arith.constant 0 : index
    %c0_1 = arith.constant 0 : index
    %0 = vector.load %arg2[%c0, %c0_0, %c0_1] : memref<1x16x2048xf32, #tpu.memory_space<vmem>>, vector<1x16x2048xf32>
    %1 = vector.shape_cast %0 : vector<1x16x2048xf32> to vector<16x2048xf32>
    %c0_2 = arith.constant 0 : index
    %c0_3 = arith.constant 0 : index
    %c0_4 = arith.constant 0 : index
    %2 = vector.load %arg3[%c0_2, %c0_3, %c0_4] : memref<1x8x2xf32, #tpu.memory_space<vmem>>, vector<1x8x2xf32>
    %3 = vector.shape_cast %2 : vector<1x8x2xf32> to vector<8x2xf32>
    %4 = vector.extract_strided_slice %3 {offsets = [0, 0], sizes = [8, 1], strides = [1, 1]} : vector<8x2xf32> to vector<8x1xf32>
    %5 = vector.extract_strided_slice %3 {offsets = [0, 1], sizes = [8, 1], strides = [1, 1]} : vector<8x2xf32> to vector<8x1xf32>
    %cst = arith.constant 6.300000e+01 : f32
    %6 = vector.broadcast %cst : f32 to vector<8x1xf32>
    %7 = arith.divf %4, %6 : vector<8x1xf32>
    %cst_5 = arith.constant 2.000000e+00 : f32
    %8 = vector.broadcast %cst_5 : f32 to vector<8x1xf32>
    %9 = arith.mulf %8, %7 : vector<8x1xf32>
    %cst_6 = arith.constant 1.000000e+00 : f32
    %10 = vector.broadcast %cst_6 : f32 to vector<8x1xf32>
    %11 = arith.subf %9, %10 : vector<8x1xf32>
    %cst_7 = arith.constant 6.300000e+01 : f32
    %12 = vector.broadcast %cst_7 : f32 to vector<8x1xf32>
    %13 = arith.divf %5, %12 : vector<8x1xf32>
    %cst_8 = arith.constant 2.000000e+00 : f32
    %14 = vector.broadcast %cst_8 : f32 to vector<8x1xf32>
    %15 = arith.mulf %14, %13 : vector<8x1xf32>
    %cst_9 = arith.constant 1.000000e+00 : f32
    %16 = vector.broadcast %cst_9 : f32 to vector<8x1xf32>
    %17 = arith.subf %15, %16 : vector<8x1xf32>
    %cst_10 = arith.constant 1.000000e+00 : f32
    %18 = vector.broadcast %cst_10 : f32 to vector<8x1xf32>
    %19 = arith.addf %11, %18 : vector<8x1xf32>
    %cst_11 = arith.constant 1.600000e+01 : f32
    %20 = vector.broadcast %cst_11 : f32 to vector<8x1xf32>
    %21 = arith.mulf %19, %20 : vector<8x1xf32>
    %cst_12 = arith.constant 1.000000e+00 : f32
    %22 = vector.broadcast %cst_12 : f32 to vector<8x1xf32>
    %23 = arith.subf %21, %22 : vector<8x1xf32>
    %cst_13 = arith.constant 5.000000e-01 : f32
    %24 = vector.broadcast %cst_13 : f32 to vector<8x1xf32>
    %25 = arith.mulf %23, %24 : vector<8x1xf32>
    %cst_14 = arith.constant 1.000000e+00 : f32
    %26 = vector.broadcast %cst_14 : f32 to vector<8x1xf32>
    %27 = arith.addf %17, %26 : vector<8x1xf32>
    %cst_15 = arith.constant 1.600000e+01 : f32
    %28 = vector.broadcast %cst_15 : f32 to vector<8x1xf32>
    %29 = arith.mulf %27, %28 : vector<8x1xf32>
    %cst_16 = arith.constant 1.000000e+00 : f32
    %30 = vector.broadcast %cst_16 : f32 to vector<8x1xf32>
    %31 = arith.subf %29, %30 : vector<8x1xf32>
    %cst_17 = arith.constant 5.000000e-01 : f32
    %32 = vector.broadcast %cst_17 : f32 to vector<8x1xf32>
    %33 = arith.mulf %31, %32 : vector<8x1xf32>
    %34 = math.floor %25 : vector<8x1xf32>
    %35 = math.floor %33 : vector<8x1xf32>
    %36 = arith.subf %25, %34 : vector<8x1xf32>
    %37 = arith.subf %33, %35 : vector<8x1xf32>
    %38 = arith.fptosi %34 : vector<8x1xf32> to vector<8x1xi32>
    %39 = arith.fptosi %35 : vector<8x1xf32> to vector<8x1xi32>
    %cst_18 = arith.constant 1.000000e+00 : f32
    %40 = vector.broadcast %cst_18 : f32 to vector<8x1xf32>
    %41 = arith.addf %36, %40 : vector<8x1xf32>
    %cst_19 = arith.constant -7.500000e-01 : f32
    %42 = vector.broadcast %cst_19 : f32 to vector<8x1xf32>
    %43 = arith.mulf %42, %41 : vector<8x1xf32>
    %cst_20 = arith.constant -3.750000e+00 : f32
    %44 = vector.broadcast %cst_20 : f32 to vector<8x1xf32>
    %45 = arith.subf %43, %44 : vector<8x1xf32>
    %46 = arith.mulf %45, %41 : vector<8x1xf32>
    %cst_21 = arith.constant -6.000000e+00 : f32
    %47 = vector.broadcast %cst_21 : f32 to vector<8x1xf32>
    %48 = arith.addf %46, %47 : vector<8x1xf32>
    %49 = arith.mulf %48, %41 : vector<8x1xf32>
    %cst_22 = arith.constant -3.000000e+00 : f32
    %50 = vector.broadcast %cst_22 : f32 to vector<8x1xf32>
    %51 = arith.subf %49, %50 : vector<8x1xf32>
    %cst_23 = arith.constant 1.250000e+00 : f32
    %52 = vector.broadcast %cst_23 : f32 to vector<8x1xf32>
    %53 = arith.mulf %52, %36 : vector<8x1xf32>
    %cst_24 = arith.constant 2.250000e+00 : f32
    %54 = vector.broadcast %cst_24 : f32 to vector<8x1xf32>
    %55 = arith.subf %53, %54 : vector<8x1xf32>
    %56 = arith.mulf %55, %36 : vector<8x1xf32>
    %57 = arith.mulf %56, %36 : vector<8x1xf32>
    %cst_25 = arith.constant 1.000000e+00 : f32
    %58 = vector.broadcast %cst_25 : f32 to vector<8x1xf32>
    %59 = arith.addf %57, %58 : vector<8x1xf32>
    %cst_26 = arith.constant 1.000000e+00 : f32
    %60 = vector.broadcast %cst_26 : f32 to vector<8x1xf32>
    %61 = arith.subf %60, %36 : vector<8x1xf32>
    %cst_27 = arith.constant 1.250000e+00 : f32
    %62 = vector.broadcast %cst_27 : f32 to vector<8x1xf32>
    %63 = arith.mulf %62, %61 : vector<8x1xf32>
    %cst_28 = arith.constant 2.250000e+00 : f32
    %64 = vector.broadcast %cst_28 : f32 to vector<8x1xf32>
    %65 = arith.subf %63, %64 : vector<8x1xf32>
    %66 = arith.mulf %65, %61 : vector<8x1xf32>
    %67 = arith.mulf %66, %61 : vector<8x1xf32>
    %cst_29 = arith.constant 1.000000e+00 : f32
    %68 = vector.broadcast %cst_29 : f32 to vector<8x1xf32>
    %69 = arith.addf %67, %68 : vector<8x1xf32>
    %cst_30 = arith.constant 2.000000e+00 : f32
    %70 = vector.broadcast %cst_30 : f32 to vector<8x1xf32>
    %71 = arith.subf %70, %36 : vector<8x1xf32>
    %cst_31 = arith.constant -7.500000e-01 : f32
    %72 = vector.broadcast %cst_31 : f32 to vector<8x1xf32>
    %73 = arith.mulf %72, %71 : vector<8x1xf32>
    %cst_32 = arith.constant -3.750000e+00 : f32
    %74 = vector.broadcast %cst_32 : f32 to vector<8x1xf32>
    %75 = arith.subf %73, %74 : vector<8x1xf32>
    %76 = arith.mulf %75, %71 : vector<8x1xf32>
    %cst_33 = arith.constant -6.000000e+00 : f32
    %77 = vector.broadcast %cst_33 : f32 to vector<8x1xf32>
    %78 = arith.addf %76, %77 : vector<8x1xf32>
    %79 = arith.mulf %78, %71 : vector<8x1xf32>
    %cst_34 = arith.constant -3.000000e+00 : f32
    %80 = vector.broadcast %cst_34 : f32 to vector<8x1xf32>
    %81 = arith.subf %79, %80 : vector<8x1xf32>
    %cst_35 = arith.constant 1.000000e+00 : f32
    %82 = vector.broadcast %cst_35 : f32 to vector<8x1xf32>
    %83 = arith.addf %37, %82 : vector<8x1xf32>
    %cst_36 = arith.constant -7.500000e-01 : f32
    %84 = vector.broadcast %cst_36 : f32 to vector<8x1xf32>
    %85 = arith.mulf %84, %83 : vector<8x1xf32>
    %cst_37 = arith.constant -3.750000e+00 : f32
    %86 = vector.broadcast %cst_37 : f32 to vector<8x1xf32>
    %87 = arith.subf %85, %86 : vector<8x1xf32>
    %88 = arith.mulf %87, %83 : vector<8x1xf32>
    %cst_38 = arith.constant -6.000000e+00 : f32
    %89 = vector.broadcast %cst_38 : f32 to vector<8x1xf32>
    %90 = arith.addf %88, %89 : vector<8x1xf32>
    %91 = arith.mulf %90, %83 : vector<8x1xf32>
    %cst_39 = arith.constant -3.000000e+00 : f32
    %92 = vector.broadcast %cst_39 : f32 to vector<8x1xf32>
    %93 = arith.subf %91, %92 : vector<8x1xf32>
    %cst_40 = arith.constant 1.250000e+00 : f32
    %94 = vector.broadcast %cst_40 : f32 to vector<8x1xf32>
    %95 = arith.mulf %94, %37 : vector<8x1xf32>
    %cst_41 = arith.constant 2.250000e+00 : f32
    %96 = vector.broadcast %cst_41 : f32 to vector<8x1xf32>
    %97 = arith.subf %95, %96 : vector<8x1xf32>
    %98 = arith.mulf %97, %37 : vector<8x1xf32>
    %99 = arith.mulf %98, %37 : vector<8x1xf32>
    %cst_42 = arith.constant 1.000000e+00 : f32
    %100 = vector.broadcast %cst_42 : f32 to vector<8x1xf32>
    %101 = arith.addf %99, %100 : vector<8x1xf32>
    %cst_43 = arith.constant 1.000000e+00 : f32
    %102 = vector.broadcast %cst_43 : f32 to vector<8x1xf32>
    %103 = arith.subf %102, %37 : vector<8x1xf32>
    %cst_44 = arith.constant 1.250000e+00 : f32
    %104 = vector.broadcast %cst_44 : f32 to vector<8x1xf32>
    %105 = arith.mulf %104, %103 : vector<8x1xf32>
    %cst_45 = arith.constant 2.250000e+00 : f32
    %106 = vector.broadcast %cst_45 : f32 to vector<8x1xf32>
    %107 = arith.subf %105, %106 : vector<8x1xf32>
    %108 = arith.mulf %107, %103 : vector<8x1xf32>
    %109 = arith.mulf %108, %103 : vector<8x1xf32>
    %cst_46 = arith.constant 1.000000e+00 : f32
    %110 = vector.broadcast %cst_46 : f32 to vector<8x1xf32>
    %111 = arith.addf %109, %110 : vector<8x1xf32>
    %cst_47 = arith.constant 2.000000e+00 : f32
    %112 = vector.broadcast %cst_47 : f32 to vector<8x1xf32>
    %113 = arith.subf %112, %37 : vector<8x1xf32>
    %cst_48 = arith.constant -7.500000e-01 : f32
    %114 = vector.broadcast %cst_48 : f32 to vector<8x1xf32>
    %115 = arith.mulf %114, %113 : vector<8x1xf32>
    %cst_49 = arith.constant -3.750000e+00 : f32
    %116 = vector.broadcast %cst_49 : f32 to vector<8x1xf32>
    %117 = arith.subf %115, %116 : vector<8x1xf32>
    %118 = arith.mulf %117, %113 : vector<8x1xf32>
    %cst_50 = arith.constant -6.000000e+00 : f32
    %119 = vector.broadcast %cst_50 : f32 to vector<8x1xf32>
    %120 = arith.addf %118, %119 : vector<8x1xf32>
    %121 = arith.mulf %120, %113 : vector<8x1xf32>
    %cst_51 = arith.constant -3.000000e+00 : f32
    %122 = vector.broadcast %cst_51 : f32 to vector<8x1xf32>
    %123 = arith.subf %121, %122 : vector<8x1xf32>
    %124 = tpu.iota {dimensions = array<i32: 1>} : vector<1x16xi32>
    %125 = tpu.iota {dimensions = array<i32: 1>} : vector<1x16xi32>
    %cst_52 = arith.constant 0.000000e+00 : f32
    %126 = vector.broadcast %cst_52 : f32 to vector<8x16xf32>
    %cst_53 = arith.constant 0.000000e+00 : f32
    %127 = vector.broadcast %cst_53 : f32 to vector<8x16xf32>
    %c-1_i32 = arith.constant -1 : i32
    %128 = vector.broadcast %c-1_i32 : i32 to vector<8x1xi32>
    %129 = arith.addi %39, %128 : vector<8x1xi32>
    %130 = vector.broadcast %124 : vector<1x16xi32> to vector<8x16xi32>
    %131 = vector.broadcast %129 : vector<8x1xi32> to vector<8x16xi32>
    %132 = arith.cmpi eq, %130, %131 : vector<8x16xi32>
    %cst_54 = arith.constant 0.000000e+00 : f32
    %133 = vector.shape_cast %93 : vector<8x1xf32> to vector<8x1xf32>
    %134 = vector.broadcast %133 : vector<8x1xf32> to vector<8x16xf32>
    %135 = vector.broadcast %cst_54 : f32 to vector<8x16xf32>
    %136 = arith.select %132, %134, %135 : vector<8x16xi1>, vector<8x16xf32>
    %137 = arith.addf %126, %136 : vector<8x16xf32>
    %c-1_i32_55 = arith.constant -1 : i32
    %138 = vector.broadcast %c-1_i32_55 : i32 to vector<8x1xi32>
    %139 = arith.addi %38, %138 : vector<8x1xi32>
    %140 = vector.broadcast %125 : vector<1x16xi32> to vector<8x16xi32>
    %141 = vector.broadcast %139 : vector<8x1xi32> to vector<8x16xi32>
    %142 = arith.cmpi eq, %140, %141 : vector<8x16xi32>
    %cst_56 = arith.constant 0.000000e+00 : f32
    %143 = vector.shape_cast %51 : vector<8x1xf32> to vector<8x1xf32>
    %144 = vector.broadcast %143 : vector<8x1xf32> to vector<8x16xf32>
    %145 = vector.broadcast %cst_56 : f32 to vector<8x16xf32>
    %146 = arith.select %142, %144, %145 : vector<8x16xi1>, vector<8x16xf32>
    %147 = arith.addf %127, %146 : vector<8x16xf32>
    %c0_i32 = arith.constant 0 : i32
    %148 = vector.broadcast %c0_i32 : i32 to vector<8x1xi32>
    %149 = arith.addi %39, %148 : vector<8x1xi32>
    %150 = vector.broadcast %124 : vector<1x16xi32> to vector<8x16xi32>
    %151 = vector.broadcast %149 : vector<8x1xi32> to vector<8x16xi32>
    %152 = arith.cmpi eq, %150, %151 : vector<8x16xi32>
    %cst_57 = arith.constant 0.000000e+00 : f32
    %153 = vector.shape_cast %101 : vector<8x1xf32> to vector<8x1xf32>
    %154 = vector.broadcast %153 : vector<8x1xf32> to vector<8x16xf32>
    %155 = vector.broadcast %cst_57 : f32 to vector<8x16xf32>
    %156 = arith.select %152, %154, %155 : vector<8x16xi1>, vector<8x16xf32>
    %157 = arith.addf %137, %156 : vector<8x16xf32>
    %c0_i32_58 = arith.constant 0 : i32
    %158 = vector.broadcast %c0_i32_58 : i32 to vector<8x1xi32>
    %159 = arith.addi %38, %158 : vector<8x1xi32>
    %160 = vector.broadcast %125 : vector<1x16xi32> to vector<8x16xi32>
    %161 = vector.broadcast %159 : vector<8x1xi32> to vector<8x16xi32>
    %162 = arith.cmpi eq, %160, %161 : vector<8x16xi32>
    %cst_59 = arith.constant 0.000000e+00 : f32
    %163 = vector.shape_cast %59 : vector<8x1xf32> to vector<8x1xf32>
    %164 = vector.broadcast %163 : vector<8x1xf32> to vector<8x16xf32>
    %165 = vector.broadcast %cst_59 : f32 to vector<8x16xf32>
    %166 = arith.select %162, %164, %165 : vector<8x16xi1>, vector<8x16xf32>
    %167 = arith.addf %147, %166 : vector<8x16xf32>
    %c1_i32 = arith.constant 1 : i32
    %168 = vector.broadcast %c1_i32 : i32 to vector<8x1xi32>
    %169 = arith.addi %39, %168 : vector<8x1xi32>
    %170 = vector.broadcast %124 : vector<1x16xi32> to vector<8x16xi32>
    %171 = vector.broadcast %169 : vector<8x1xi32> to vector<8x16xi32>
    %172 = arith.cmpi eq, %170, %171 : vector<8x16xi32>
    %cst_60 = arith.constant 0.000000e+00 : f32
    %173 = vector.shape_cast %111 : vector<8x1xf32> to vector<8x1xf32>
    %174 = vector.broadcast %173 : vector<8x1xf32> to vector<8x16xf32>
    %175 = vector.broadcast %cst_60 : f32 to vector<8x16xf32>
    %176 = arith.select %172, %174, %175 : vector<8x16xi1>, vector<8x16xf32>
    %177 = arith.addf %157, %176 : vector<8x16xf32>
    %c1_i32_61 = arith.constant 1 : i32
    %178 = vector.broadcast %c1_i32_61 : i32 to vector<8x1xi32>
    %179 = arith.addi %38, %178 : vector<8x1xi32>
    %180 = vector.broadcast %125 : vector<1x16xi32> to vector<8x16xi32>
    %181 = vector.broadcast %179 : vector<8x1xi32> to vector<8x16xi32>
    %182 = arith.cmpi eq, %180, %181 : vector<8x16xi32>
    %cst_62 = arith.constant 0.000000e+00 : f32
    %183 = vector.shape_cast %69 : vector<8x1xf32> to vector<8x1xf32>
    %184 = vector.broadcast %183 : vector<8x1xf32> to vector<8x16xf32>
    %185 = vector.broadcast %cst_62 : f32 to vector<8x16xf32>
    %186 = arith.select %182, %184, %185 : vector<8x16xi1>, vector<8x16xf32>
    %187 = arith.addf %167, %186 : vector<8x16xf32>
    %c2_i32 = arith.constant 2 : i32
    %188 = vector.broadcast %c2_i32 : i32 to vector<8x1xi32>
    %189 = arith.addi %39, %188 : vector<8x1xi32>
    %190 = vector.broadcast %124 : vector<1x16xi32> to vector<8x16xi32>
    %191 = vector.broadcast %189 : vector<8x1xi32> to vector<8x16xi32>
    %192 = arith.cmpi eq, %190, %191 : vector<8x16xi32>
    %cst_63 = arith.constant 0.000000e+00 : f32
    %193 = vector.shape_cast %123 : vector<8x1xf32> to vector<8x1xf32>
    %194 = vector.broadcast %193 : vector<8x1xf32> to vector<8x16xf32>
    %195 = vector.broadcast %cst_63 : f32 to vector<8x16xf32>
    %196 = arith.select %192, %194, %195 : vector<8x16xi1>, vector<8x16xf32>
    %197 = arith.addf %177, %196 : vector<8x16xf32>
    %c2_i32_64 = arith.constant 2 : i32
    %198 = vector.broadcast %c2_i32_64 : i32 to vector<8x1xi32>
    %199 = arith.addi %38, %198 : vector<8x1xi32>
    %200 = vector.broadcast %125 : vector<1x16xi32> to vector<8x16xi32>
    %201 = vector.broadcast %199 : vector<8x1xi32> to vector<8x16xi32>
    %202 = arith.cmpi eq, %200, %201 : vector<8x16xi32>
    %cst_65 = arith.constant 0.000000e+00 : f32
    %203 = vector.shape_cast %81 : vector<8x1xf32> to vector<8x1xf32>
    %204 = vector.broadcast %203 : vector<8x1xf32> to vector<8x16xf32>
    %205 = vector.broadcast %cst_65 : f32 to vector<8x16xf32>
    %206 = arith.select %202, %204, %205 : vector<8x16xi1>, vector<8x16xf32>
    %207 = arith.addf %187, %206 : vector<8x16xf32>
    %cst_66 = arith.constant dense<0.000000e+00> : vector<8x2048xf32>
    %208 = tpu.matmul %197, %1, %cst_66 {dimension_numbers = #tpu.dot_dimension_numbers<[1], [0], [0], [1], [0, 0, 1, 1], [], []>} : vector<8x16xf32>, vector<16x2048xf32>, vector<8x2048xf32> -> vector<8x2048xf32>
    %cst_67 = arith.constant 0.000000e+00 : f32
    %209 = vector.broadcast %cst_67 : f32 to vector<8x128xf32>
    %210 = vector.extract_strided_slice %207 {offsets = [0, 0], sizes = [8, 1], strides = [1, 1]} : vector<8x16xf32> to vector<8x1xf32>
    %211 = vector.extract_strided_slice %208 {offsets = [0, 0], sizes = [8, 128], strides = [1, 1]} : vector<8x2048xf32> to vector<8x128xf32>
    %212 = vector.broadcast %210 : vector<8x1xf32> to vector<8x128xf32>
    %213 = arith.mulf %212, %211 : vector<8x128xf32>
    %214 = arith.addf %209, %213 : vector<8x128xf32>
    %215 = vector.extract_strided_slice %207 {offsets = [0, 1], sizes = [8, 1], strides = [1, 1]} : vector<8x16xf32> to vector<8x1xf32>
    %216 = vector.extract_strided_slice %208 {offsets = [0, 128], sizes = [8, 128], strides = [1, 1]} : vector<8x2048xf32> to vector<8x128xf32>
    %217 = vector.broadcast %215 : vector<8x1xf32> to vector<8x128xf32>
    %218 = arith.mulf %217, %216 : vector<8x128xf32>
    %219 = arith.addf %214, %218 : vector<8x128xf32>
    %220 = vector.extract_strided_slice %207 {offsets = [0, 2], sizes = [8, 1], strides = [1, 1]} : vector<8x16xf32> to vector<8x1xf32>
    %221 = vector.extract_strided_slice %208 {offsets = [0, 256], sizes = [8, 128], strides = [1, 1]} : vector<8x2048xf32> to vector<8x128xf32>
    %222 = vector.broadcast %220 : vector<8x1xf32> to vector<8x128xf32>
    %223 = arith.mulf %222, %221 : vector<8x128xf32>
    %224 = arith.addf %219, %223 : vector<8x128xf32>
    %225 = vector.extract_strided_slice %207 {offsets = [0, 3], sizes = [8, 1], strides = [1, 1]} : vector<8x16xf32> to vector<8x1xf32>
    %226 = vector.extract_strided_slice %208 {offsets = [0, 384], sizes = [8, 128], strides = [1, 1]} : vector<8x2048xf32> to vector<8x128xf32>
    %227 = vector.broadcast %225 : vector<8x1xf32> to vector<8x128xf32>
    %228 = arith.mulf %227, %226 : vector<8x128xf32>
    %229 = arith.addf %224, %228 : vector<8x128xf32>
    %230 = vector.extract_strided_slice %207 {offsets = [0, 4], sizes = [8, 1], strides = [1, 1]} : vector<8x16xf32> to vector<8x1xf32>
    %231 = vector.extract_strided_slice %208 {offsets = [0, 512], sizes = [8, 128], strides = [1, 1]} : vector<8x2048xf32> to vector<8x128xf32>
    %232 = vector.broadcast %230 : vector<8x1xf32> to vector<8x128xf32>
    %233 = arith.mulf %232, %231 : vector<8x128xf32>
    %234 = arith.addf %229, %233 : vector<8x128xf32>
    %235 = vector.extract_strided_slice %207 {offsets = [0, 5], sizes = [8, 1], strides = [1, 1]} : vector<8x16xf32> to vector<8x1xf32>
    %236 = vector.extract_strided_slice %208 {offsets = [0, 640], sizes = [8, 128], strides = [1, 1]} : vector<8x2048xf32> to vector<8x128xf32>
    %237 = vector.broadcast %235 : vector<8x1xf32> to vector<8x128xf32>
    %238 = arith.mulf %237, %236 : vector<8x128xf32>
    %239 = arith.addf %234, %238 : vector<8x128xf32>
    %240 = vector.extract_strided_slice %207 {offsets = [0, 6], sizes = [8, 1], strides = [1, 1]} : vector<8x16xf32> to vector<8x1xf32>
    %241 = vector.extract_strided_slice %208 {offsets = [0, 768], sizes = [8, 128], strides = [1, 1]} : vector<8x2048xf32> to vector<8x128xf32>
    %242 = vector.broadcast %240 : vector<8x1xf32> to vector<8x128xf32>
    %243 = arith.mulf %242, %241 : vector<8x128xf32>
    %244 = arith.addf %239, %243 : vector<8x128xf32>
    %245 = vector.extract_strided_slice %207 {offsets = [0, 7], sizes = [8, 1], strides = [1, 1]} : vector<8x16xf32> to vector<8x1xf32>
    %246 = vector.extract_strided_slice %208 {offsets = [0, 896], sizes = [8, 128], strides = [1, 1]} : vector<8x2048xf32> to vector<8x128xf32>
    %247 = vector.broadcast %245 : vector<8x1xf32> to vector<8x128xf32>
    %248 = arith.mulf %247, %246 : vector<8x128xf32>
    %249 = arith.addf %244, %248 : vector<8x128xf32>
    %250 = vector.extract_strided_slice %207 {offsets = [0, 8], sizes = [8, 1], strides = [1, 1]} : vector<8x16xf32> to vector<8x1xf32>
    %251 = vector.extract_strided_slice %208 {offsets = [0, 1024], sizes = [8, 128], strides = [1, 1]} : vector<8x2048xf32> to vector<8x128xf32>
    %252 = vector.broadcast %250 : vector<8x1xf32> to vector<8x128xf32>
    %253 = arith.mulf %252, %251 : vector<8x128xf32>
    %254 = arith.addf %249, %253 : vector<8x128xf32>
    %255 = vector.extract_strided_slice %207 {offsets = [0, 9], sizes = [8, 1], strides = [1, 1]} : vector<8x16xf32> to vector<8x1xf32>
    %256 = vector.extract_strided_slice %208 {offsets = [0, 1152], sizes = [8, 128], strides = [1, 1]} : vector<8x2048xf32> to vector<8x128xf32>
    %257 = vector.broadcast %255 : vector<8x1xf32> to vector<8x128xf32>
    %258 = arith.mulf %257, %256 : vector<8x128xf32>
    %259 = arith.addf %254, %258 : vector<8x128xf32>
    %260 = vector.extract_strided_slice %207 {offsets = [0, 10], sizes = [8, 1], strides = [1, 1]} : vector<8x16xf32> to vector<8x1xf32>
    %261 = vector.extract_strided_slice %208 {offsets = [0, 1280], sizes = [8, 128], strides = [1, 1]} : vector<8x2048xf32> to vector<8x128xf32>
    %262 = vector.broadcast %260 : vector<8x1xf32> to vector<8x128xf32>
    %263 = arith.mulf %262, %261 : vector<8x128xf32>
    %264 = arith.addf %259, %263 : vector<8x128xf32>
    %265 = vector.extract_strided_slice %207 {offsets = [0, 11], sizes = [8, 1], strides = [1, 1]} : vector<8x16xf32> to vector<8x1xf32>
    %266 = vector.extract_strided_slice %208 {offsets = [0, 1408], sizes = [8, 128], strides = [1, 1]} : vector<8x2048xf32> to vector<8x128xf32>
    %267 = vector.broadcast %265 : vector<8x1xf32> to vector<8x128xf32>
    %268 = arith.mulf %267, %266 : vector<8x128xf32>
    %269 = arith.addf %264, %268 : vector<8x128xf32>
    %270 = vector.extract_strided_slice %207 {offsets = [0, 12], sizes = [8, 1], strides = [1, 1]} : vector<8x16xf32> to vector<8x1xf32>
    %271 = vector.extract_strided_slice %208 {offsets = [0, 1536], sizes = [8, 128], strides = [1, 1]} : vector<8x2048xf32> to vector<8x128xf32>
    %272 = vector.broadcast %270 : vector<8x1xf32> to vector<8x128xf32>
    %273 = arith.mulf %272, %271 : vector<8x128xf32>
    %274 = arith.addf %269, %273 : vector<8x128xf32>
    %275 = vector.extract_strided_slice %207 {offsets = [0, 13], sizes = [8, 1], strides = [1, 1]} : vector<8x16xf32> to vector<8x1xf32>
    %276 = vector.extract_strided_slice %208 {offsets = [0, 1664], sizes = [8, 128], strides = [1, 1]} : vector<8x2048xf32> to vector<8x128xf32>
    %277 = vector.broadcast %275 : vector<8x1xf32> to vector<8x128xf32>
    %278 = arith.mulf %277, %276 : vector<8x128xf32>
    %279 = arith.addf %274, %278 : vector<8x128xf32>
    %280 = vector.extract_strided_slice %207 {offsets = [0, 14], sizes = [8, 1], strides = [1, 1]} : vector<8x16xf32> to vector<8x1xf32>
    %281 = vector.extract_strided_slice %208 {offsets = [0, 1792], sizes = [8, 128], strides = [1, 1]} : vector<8x2048xf32> to vector<8x128xf32>
    %282 = vector.broadcast %280 : vector<8x1xf32> to vector<8x128xf32>
    %283 = arith.mulf %282, %281 : vector<8x128xf32>
    %284 = arith.addf %279, %283 : vector<8x128xf32>
    %285 = vector.extract_strided_slice %207 {offsets = [0, 15], sizes = [8, 1], strides = [1, 1]} : vector<8x16xf32> to vector<8x1xf32>
    %286 = vector.extract_strided_slice %208 {offsets = [0, 1920], sizes = [8, 128], strides = [1, 1]} : vector<8x2048xf32> to vector<8x128xf32>
    %287 = vector.broadcast %285 : vector<8x1xf32> to vector<8x128xf32>
    %288 = arith.mulf %287, %286 : vector<8x128xf32>
    %289 = arith.addf %284, %288 : vector<8x128xf32>
    %c0_68 = arith.constant 0 : index
    %c0_69 = arith.constant 0 : index
    %c0_70 = arith.constant 0 : index
    %290 = vector.load %arg4[%c0_68, %c0_69, %c0_70] : memref<1x8x128xf32, #tpu.memory_space<vmem>>, vector<1x8x128xf32>
    %291 = vector.shape_cast %290 : vector<1x8x128xf32> to vector<8x128xf32>
    %292 = vector.shape_cast %289 : vector<8x128xf32> to vector<1x8x128xf32>
    tpu.vector_store %arg4[%c0_68, %c0_69, %c0_70], %292 {strides = array<i32>} : memref<1x8x128xf32, #tpu.memory_space<vmem>>, vector<1x8x128xf32>,
    return
  }
  func.func @transform_0(%arg0: i32, %arg1: i32) -> (i32, i32, i32) {
    %c0_i32 = arith.constant 0 : i32
    %c0_i32_0 = arith.constant 0 : i32
    %c0_i32_1 = arith.constant 0 : i32
    return %arg0, %c0_i32, %c0_i32_0 : i32, i32, i32
  }
  func.func @transform_1(%arg0: i32, %arg1: i32) -> (i32, i32, i32) {
    %c0_i32 = arith.constant 0 : i32
    %c0_i32_0 = arith.constant 0 : i32
    return %arg0, %arg1, %c0_i32 : i32, i32, i32
  }
  func.func @transform_2(%arg0: i32, %arg1: i32) -> (i32, i32, i32) {
    %c0_i32 = arith.constant 0 : i32
    %c0_i32_0 = arith.constant 0 : i32
    return %arg0, %arg1, %c0_i32 : i32, i32, i32
  }
}

</mosaic_0001>

<bundles_post_ra>
// kernel: tpu_custom_call.1
= control target key start
LH: loop header
LB: loop body
LE: loop exit
PB: predicated region body
PF: predicated region fallthrough
CT: control target
= control target key end

     0   :  { %7 = vsyncpa [#allocation3], 0  ;;  %s1406_s0 = inlined_call_operand.hbm [shape: f32[2,16,2048], index: 0, kind: input, shape index: {}]   ;;  %s1407_s1 = inlined_call_operand.vmem [shape: f32[2,8,2], index: 1, kind: input, shape index: {}]   ;;  %s1408_s2 = inlined_call_operand.hbm [shape: f32[2,8,128], index: 2, kind: output, shape index: {}]  }
   0x1   :  { %9 = vsyncpa [#allocation3 + $0x1], 0 }
   0x2   :  { %10 = vsyncpa [#allocation4], 0 }
   0x3   :  { %12 = vsyncpa [#allocation4 + $0x1], 0  ;;  %s1198_s9 = smov 0   ;;  %s1200_s10 = smov 0  }
   0x4   :  { %s1202_s11 = smov 0   ;;  %s1204_s12 = smov 0  }
   0x5   :  { %s1206_s13 = smov 0   ;;  %s1208_s14 = smov 0  }
   0x6 LB: > { %s903_s15 = sadd.s32 4294967295, %s1162_s14   ;;  %s904_s16 = sadd.s32 4294967294, %s1162_s14   ;;  %s1162_s14 = sphi %s1208_s14, %s18_s14   ;;  %s1158_s13 = sphi %s1206_s13, %s1417_s13   ;;  %s1154_s12 = sphi %s1204_s12, %s1416_s12   ;;  %s1150_s11 = sphi %s1202_s11, %s1415_s11   ;;  %s1146_s10 = sphi %s1200_s10, %s1414_s10   ;;  %s1142_s9 = sphi %s1198_s9, %s1413_s9  }
   0x7   : > { %s30_s17 = sadd.s32 1, %s1158_s13  ;;  %s37_s18 = sadd.s32 1, %s1150_s11 }
   0x8   : > { %p32_p0 = scmp.ge.s32.totalorder %s30_s17, 2  ;;  %p44_p1 = scmp.ne.s32.totalorder %s1150_s11, %s1146_s10 }
   0x9   : > { %p45_p2 = scmp.eq.s32.totalorder %s1162_s14, 0  ;;  %p50_p3 = scmp.ne.s32.totalorder %s1146_s10, %s1142_s9 }
   0xa   : > { %s1419_s17 = smov (%p32_p0, %s30_s17), 0  ;;  %p51_p5 = scmp.eq.s32.totalorder %s903_s15, 0 }
   0xb   : > { %p1239_p4 = por %p45_p2, %p44_p1  ;;  %s34_s20 = ssub.s32 %s1158_s13, %s1419_s17 }
   0xc   : > { %p104_p6 = scmp.eq.s32.totalorder %s903_s15, 1  ;;  %p35_p7 = scmp.eq.s32.totalorder %s34_s20, 0 }
   0xd   : > { %p1245_p8 = por %p51_p5, %p50_p3  ;;  %p110_p10 = scmp.eq.s32.totalorder %s904_s16, 1 }
   0xe   : > { %p1249_p9 = por %p104_p6, %p44_p1  ;;  %p906_p12 = scmp.ge.s32.totalorder %s1162_s14, 2 }
   0xf   : > { %s1254_s23 = scalar_select %p35_p7, %s1150_s11, %s37_s18  }
  0x10   : > { %p1256_p11 = por %p110_p10, %p50_p3  ;;  %p957_p13 = scmp.lt.s32.totalorder %s1162_s14, 2 }
  0x11   : > { %s130_s25 = sand.u32 1, %s1150_s11   ;;  %s942_s27 = sshll.u32 %s1158_s13, 8 }
  0x12   : > { %s907_s26 = sshll.u32 %s130_s25, 8  ;;  %s139_s30 = scalar_lea.hbm %s1406_s0, %s942_s27 }
  0x13   : > { %s134_s3 = scalar_lea.vmem [#allocation2], %s907_s26  ;;  %s140_s5 = sshll.u32 %s139_s30, 4  ;;  %s141_s5 = int_to_ptr.hbm [resolvable:$true] %s140_s5 }
  0x14   : > { %s142_s4 = sshll.u32 %s134_s3, 4  ;;  %p950_p0 = pnand %p957_p13, %p1239_p4  ;;  %s143_s4 = int_to_ptr.vmem [resolvable:$true] %s142_s4 }
  0x15   : > { %p910_p1 = scmp.ge.s32.totalorder %s1162_s14, 1  ;;  %s131_s6 = scalar_lea.sflag [#allocation3], %s130_s25 }
  0x16   : > { %s1164_s7 = smov 2048   ;;  %s1165_s8 = smov 128  }
  0x17   : > { %952 = dma.hbm_to_vmem [thread:$0]  (!%p950_p0), %s141_s5, 4096, %s143_s4, %s131_s6, %s1164_s7, %s1164_s7, %s1165_s8  }
  0x18   : > { %p160_p2 = scmp.lt.s32.totalorder %s1162_s14, 3 }
  0x1a   : > { %p161_p3 = pnand %p910_p1, %p160_p2 }
  0x1b   : > { %s1272_s15 = sand.u32 (!%p161_p3), 1, %s1146_s10  }
  0x1c   : > { %164 = sbr.rel (%p161_p3) target bundleno = 409 (0x199), region = 28  ;;  %s911_s16 = sshll.u32 (!%p161_p3), %s1272_s15, 8 }
  0x1d   : > { %s167_s18 = scalar_lea.sflag (!%p161_p3), [#allocation3], %s1272_s15  ;;  %s1276_s20 = scalar_lea.vmem (!%p161_p3), [#allocation2], %s911_s16 }
  0x21   : > { %1133 = dma.done.wait (%p1245_p8), %s167_s18, 4096  }
  0x22   : > { %1135 = vsyncadd (%p1245_p8), %s167_s18, 4294963200  ;;  %p199_p4 = scmp.lt.s32.totalorder %s1154_s12, 1  ;;  %v1166_v0 = vmov 1   ;;  %v1167_v1 = vmov 63.0   ;;  %v1168_v46 = vmov 0   ;;  %v222_v48 = vld [vmem:[%s1276_s20 + $0x80] sm:$0xff] }
  0x23   : > { %1026 = vset.pattern.permute.xlu0 %v1166_v0  ;;  %1048 = vrcp.f32 %v1167_v1  ;;  %1028 = vset.pattern.permute.xlu1 %v1166_v0  ;;  %v223_v49 = vld [vmem:[%s1276_s20 + $0x88] sm:$0xff]  ;;  %v224_v50 = vld [vmem:[%s1276_s20 + $0x90] sm:$0xff]  ;;  %v225_v51 = vld [vmem:[%s1276_s20 + $0x98] sm:$0xff]  ;;  %vm370_vm5 = vcmask 130048   ;;  %s912_s28 = sshll.u32 %s1272_s15, 3  ;;  %s939_s29 = sshll.u32 %s1154_s12, 3 }
  0x24   : > { %1027 = vset.pattern.permute.xlu2 %v1166_v0  ;;  %s200_s19 = scalar_select %p199_p4, %s1154_s12, 1  ;;  %388 = vmatpush.msra.mxu0 %v222_v48  ;;  %v206_v52 = vld [vmem:[%s1276_s20] sm:$0xff]  ;;  %v207_v53 = vld [vmem:[%s1276_s20 + $0x8] sm:$0xff]  ;;  %v208_v54 = vld [vmem:[%s1276_s20 + $0x10] sm:$0xff] }
  0x25   : > { %408 = vmatpush.msra.mxu1 %v223_v49  ;;  %428 = vmatpush.msra.mxu2 %v224_v50  ;;  %v209_v55 = vld [vmem:[%s1276_s20 + $0x18] sm:$0xff]  ;;  %v226_v57 = vld [vmem:[%s1276_s20 + $0xa0] sm:$0xff]  ;;  %v227_v58 = vld [vmem:[%s1276_s20 + $0xa8] sm:$0xff]  ;;  %v1170_v49 = vmov 4   ;;  %v1171_v50 = vmov 6   ;;  %s804_s4 = scalar_lea.hbm %s1408_s2, %s939_s29  ;;  %s198_s5 = scalar_lea.vmem [#allocation5], %s912_s28 }
  0x26   : > { %s913_s25 = sshll.u32 %s200_s19, 3  ;;  %448 = vmatpush.msra.mxu3 %v225_v51  ;;  %389 = vmatpush.msra.mxu0 %v206_v52  ;;  %v228_v59 = vld [vmem:[%s1276_s20 + $0xb0] sm:$0xff]  ;;  %v229_v60 = vld [vmem:[%s1276_s20 + $0xb8] sm:$0xff]  ;;  %v210_v61 = vld [vmem:[%s1276_s20 + $0x20] sm:$0xff]  ;;  %v1172_v51 = vmov 3   ;;  %v1173_v52 = vmov 7  }
  0x27   : > { %s205_s27 = scalar_lea.vmem %s1407_s1, %s913_s25  ;;  %409 = vmatpush.msra.mxu1 %v207_v53  ;;  %429 = vmatpush.msra.mxu2 %v208_v54  ;;  %v211_v62 = vld [vmem:[%s1276_s20 + $0x28] sm:$0xff]  ;;  %v212_v63 = vld [vmem:[%s1276_s20 + $0x30] sm:$0xff]  ;;  %v1174_v53 = vmov 11   ;;  %v1175_v54 = vmov 5   ;;  %s806_s6 = sshll.u32 %s198_s5, 4  ;;  %s807_s6 = int_to_ptr.vmem [resolvable:$true] %s806_s6 }
  0x28   : > { %v238_v6 = vld [vmem:[%s205_s27] sm:$0xff]  ;;  %449 = vmatpush.msra.mxu3 %v209_v55  ;;  %468 = vmatpush.msrb.mxu0 %v226_v57  ;;  %v1176_v55 = vmov 9   ;;  %v1178_v57 = vmov 8   ;;  %s808_s7 = sshll.u32 %s804_s4, 4  ;;  %s793_s12 = scalar_lea.sflag [#allocation4], %s1272_s15  ;;  %s809_s7 = int_to_ptr.hbm [resolvable:$true] %s808_s7 }
  0x29   : > { %v1049_v2 = vpop.eup %1048  ;;  %488 = vmatpush.msrb.mxu1 %v227_v58  ;;  %508 = vmatpush.msrb.mxu2 %v228_v59  ;;  %v1179_v58 = vmov 12   ;;  %v1180_v59 = vmov 10   ;;  %s1094_s8 = sshra.s32 %s809_s7, 4  ;;  %s1100_s19 = scalar_lea.hbm %s1408_s2, 16  ;;  %s1095_s8 = int_to_ptr.hbm [resolvable:$true] %s1094_s8 }
  0x2a   : > { %v240_v3 = vmul.f32 63.0, %v1049_v2  ;;  %vm244_vm0 = vweird.f32 %v1049_v2  ;;  %528 = vmatpush.msrb.mxu3 %v229_v60  ;;  %469 = vmatpush.msrb.mxu0 %v210_v61  ;;  %v1181_v60 = vmov 14   ;;  %v1182_v61 = vmov 13   ;;  %s1096_s16 = scalar_lea.hbm %s1095_s8, 8  ;;  %p1101_p8 = scmp.lt.s32.totalorder %s1095_s8, %s1408_s2 }
  0x2b   : > { %489 = vmatpush.msrb.mxu1 %v211_v62  ;;  %509 = vmatpush.msrb.mxu2 %v212_v63  ;;  %p1097_p5 = scmp.ne.s32.totalorder %s1095_s8, %s1096_s16  ;;  %p1102_p10 = scmp.lt.s32.totalorder %s1100_s19, %s1096_s16 }
  0x2c   : > { %v241_v4 = vsub.f32 1.0, %v240_v3 }
  0x2d   : > { %p1098_p6 = pnand %p1097_p5, %p1249_p9  ;;  %p1103_p13 = por %p1102_p10, %p1101_p8 }
  0x2e   : > { %v242_v5 = vmul.f32 %v1049_v2, %v241_v4 }
  0x2f   : > { %p1099_p7 = pneg %p1098_p6 }
  0x30   : > { %v243_v7 = vadd.f32 %v1049_v2, %v242_v5 }
  0x31   : > { %p1104_p0 = pnand %p1103_p13, %p1099_p7 }
  0x32   : > { %v245_v8 = vsel %vm244_vm0, %v1049_v2, %v243_v7  ;;  %v281_v2 = vlaneseq }
  0x33   : > { %v246_v9 = vmul.f32 %v245_v8, %v238_v6 }
  0x34   : > { %v1307_v5 = vand.u32 127, %v281_v2 }
  0x35   : > { %v247_v10 = vmul.f32 2.0, %v246_v9 }
  0x37   : > { %v914_v11 = vadd.f32 -1.0, %v247_v10 }
  0x39   : > { %v249_v12 = vadd.f32 1.0, %v914_v11  ;;  %v1169_v11 = vmov 2  }
  0x3b   : > { %v250_v13 = vmul.f32 16.0, %v249_v12 }
  0x3d   : > { %v915_v14 = vadd.f32 -1.0, %v250_v13 }
  0x3f   : > { %v252_v15 = vmul.f32 0.5, %v915_v14 }
  0x41   : > { %v253_v16 = vfloor.f32 %v252_v15 }
  0x43   : > { %v944_v17 = vcvt.f32.s32 %v253_v16  ;;  %v254_v18 = vsub.f32 %v252_v15, %v253_v16 }
  0x45   : > { %306 = vperm.xlu0 %1026, %v944_v17   ;;  %v263_v19 = vmul.f32 1.25, %v254_v18  ;;  %v256_v20 = vadd.f32 1.0, %v254_v18  ;;  %v326_v21 = vadd.s32 1, %v944_v17  ;;  %v274_v22 = vsub.f32 2.0, %v254_v18 }
  0x46   : > { %v268_v23 = vsub.f32 1.0, %v254_v18  ;;  %v283_v28 = vadd.s32 4294967295, %v944_v17  ;;  %v348_v42 = vadd.s32 2, %v944_v17 }
  0x47   : > { %v918_v24 = vadd.f32 -2.25, %v263_v19  ;;  %v257_v25 = vmul.f32 -0.75, %v256_v20  ;;  %328 = vperm.xlu2 %1027, %v326_v21   ;;  %v275_v26 = vmul.f32 -0.75, %v274_v22  ;;  %v230_v19 = vld [vmem:[%s1276_s20 + $0xc0] sm:$0xff] }
  0x48   : > { %v269_v27 = vmul.f32 1.25, %v268_v23 }
  0x49   : > { %v265_v29 = vmul.f32 %v918_v24, %v254_v18  ;;  %v916_v30 = vadd.f32 3.75, %v257_v25  ;;  %v920_v34 = vadd.f32 3.75, %v275_v26  ;;  %v215_v24 = vld [vmem:[%s1276_s20 + $0x48] sm:$0xff]  ;;  %v216_v25 = vld [vmem:[%s1276_s20 + $0x50] sm:$0xff]  ;;  %v217_v26 = vld [vmem:[%s1276_s20 + $0x58] sm:$0xff] }
  0x4a   : > { %v919_v31 = vadd.f32 -2.25, %v269_v27 }
  0x4b   : > { %v266_v32 = vmul.f32 %v265_v29, %v254_v18  ;;  %v259_v33 = vmul.f32 %v916_v30, %v256_v20  ;;  %v277_v40 = vmul.f32 %v920_v34, %v274_v22  ;;  %v234_v29 = vld [vmem:[%s1276_s20 + $0xe0] sm:$0xff]  ;;  %v235_v30 = vld [vmem:[%s1276_s20 + $0xe8] sm:$0xff] }
  0x4c   : > { %v271_v35 = vmul.f32 %v919_v31, %v268_v23  ;;  %v218_v34 = vld [vmem:[%s1276_s20 + $0x60] sm:$0xff] }
  0x4d   : > { %285 = vperm.xlu0 %1026, %v283_v28   ;;  %v267_v36 = vadd.f32 1.0, %v266_v32  ;;  %v260_v37 = vadd.f32 -6.0, %v259_v33  ;;  %v278_v44 = vadd.f32 -6.0, %v277_v40  ;;  %v236_v32 = vld [vmem:[%s1276_s20 + $0xf0] sm:$0xff]  ;;  %v237_v33 = vld [vmem:[%s1276_s20 + $0xf8] sm:$0xff] }
  0x4e   : > { %v272_v38 = vmul.f32 %v271_v35, %v268_v23  ;;  %v214_v23 = vld [vmem:[%s1276_s20 + $0x40] sm:$0xff]  ;;  %v219_v35 = vld [vmem:[%s1276_s20 + $0x68] sm:$0xff] }
  0x4f   : > { %311 = vperm.xlu1 %1028, %v267_v36   ;;  %v261_v39 = vmul.f32 %v260_v37, %v256_v20  ;;  %v279_v45 = vmul.f32 %v278_v44, %v274_v22  ;;  %v231_v20 = vld [vmem:[%s1276_s20 + $0xc8] sm:$0xff]  ;;  %v233_v22 = vld [vmem:[%s1276_s20 + $0xd8] sm:$0xff] }
  0x50   : > { %v273_v41 = vadd.f32 1.0, %v272_v38  ;;  %v221_v37 = vld [vmem:[%s1276_s20 + $0x78] sm:$0xff] }
  0x51   : > { %v917_v43 = vadd.f32 3.0, %v261_v39  ;;  %v921_v47 = vadd.f32 3.0, %v279_v45 }
  0x52   : > { %333 = vperm.xlu2 %1027, %v273_v41  }
  0x55   : > { %350 = vperm.xlu0 %1026, %v348_v42  }
  0x57   : > { %290 = vperm.xlu1 %1028, %v917_v43  }
  0x5a   : > { %1029 = vset.pattern.permute.xlu2 %v1168_v46 }
  0x5b   : > { %296 = vperm.xlu2 %1029, %v283_v28  }
  0x5d   : > { %1031 = vset.pattern.permute.xlu0 %v1168_v46 }
  0x5e   : > { %300 = vperm.xlu0 %1031, %v917_v43  }
  0x5f   : > { %355 = vperm.xlu1 %1028, %v921_v47  }
  0x63   : > { %321 = vperm.xlu2 %1029, %v267_v36   ;;  %v220_v36 = vld [vmem:[%s1276_s20 + $0x70] sm:$0xff] }
  0x66   : > { %361 = vperm.xlu0 %1031, %v348_v42  }
  0x67   : > { %1030 = vset.pattern.permute.xlu1 %v1168_v46 }
  0x68   : > { %317 = vperm.xlu1 %1030, %v944_v17  }
  0x6b   : > { %343 = vperm.xlu2 %1029, %v273_v41  }
  0x6e   : > { %1032 = vset.pattern.permute.xlu0 %v1166_v0  ;;  %v213_v0 = vld [vmem:[%s1276_s20 + $0x38] sm:$0xff] }
  0x6f   : > { %529 = vmatpush.msrb.mxu3 %v213_v0 }
  0x70   : > { %339 = vperm.xlu1 %1030, %v326_v21   ;;  %v232_v21 = vld [vmem:[%s1276_s20 + $0xd0] sm:$0xff] }
  0x78   : > { %365 = vperm.xlu1 %1030, %v921_v47  }
  0x80   : > { %1033 = vset.pattern.permute.xlu1 %v1169_v11 }
  0xa1   : > { %v329_v1 = vpop.permute.xlu2 %328 }
  0xa2   : > { %vm330_vm3 = vcmp.eq.s32.totalorder %v1307_v5, %v329_v1 }
  0xac   : > { %v334_v6 = vpop.permute.xlu2 %333 }
  0xad   : > { %v336_v13 = vsel %vm330_vm3, %v334_v6, 0.0 }
  0xb5   : > { %v297_v16 = vpop.permute.xlu2 %296 }
  0xb6   : > { %vm298_vm7 = vcmp.eq.s32.totalorder %v1307_v5, %v297_v16 }
  0xb7   : > { %v307_v56 = vpop.permute.xlu0 %306 }
  0xb8   : > { %vm308_vm2 = vcmp.eq.s32.totalorder %v1307_v5, %v307_v56  ;;  %v1177_v56 = vmov 15  }
  0xbd   : > { %v322_v28 = vpop.permute.xlu2 %321 }
  0xbf   : > { %v286_v4 = vpop.permute.xlu0 %285 }
  0xc0   : > { %vm287_vm1 = vcmp.eq.s32.totalorder %v1307_v5, %v286_v4 }
  0xc1   : > { %v312_v3 = vpop.permute.xlu1 %311 }
  0xc2   : > { %v314_v9 = vsel %vm308_vm2, %v312_v3, 0.0 }
  0xc5   : > { %v344_v40 = vpop.permute.xlu2 %343 }
  0xc7   : > { %v351_v12 = vpop.permute.xlu0 %350 }
  0xc8   : > { %vm352_vm4 = vcmp.eq.s32.totalorder %v1307_v5, %v351_v12 }
  0xc9   : > { %v291_v7 = vpop.permute.xlu1 %290 }
  0xca   : > { %v293_v8 = vsel %vm287_vm1, %v291_v7, 0.0 }
  0xcb   : > { %v315_v10 = vadd.f32 %v314_v9, %v293_v8 }
  0xcd   : > { %v337_v14 = vadd.f32 %v336_v13, %v315_v10 }
  0xd0   : > { %v301_v31 = vpop.permute.xlu0 %300 }
  0xd1   : > { %v356_v15 = vpop.permute.xlu1 %355  ;;  %v303_v41 = vsel %vm298_vm7, %v301_v31, 0.0 }
  0xd2   : > { %v358_v17 = vsel %vm352_vm4, %v356_v15, 0.0 }
  0xd3   : > { %v1313_v18 = vadd.f32 %v358_v17, %v337_v14 }
  0xd5   : > { %922 = vmatmul.msk.f32.vlgmr.msra.gmra.mxu0 %vm370_vm5, %v1313_v18  ;;  %923 = vmatmul.msk.f32.vlgmr.msra.gmra.mxu1 %vm370_vm5, %v1313_v18 }
  0xd6   : > { %924 = vmatmul.msk.f32.vlgmr.msra.gmra.mxu2 %vm370_vm5, %v1313_v18  ;;  %925 = vmatmul.msk.f32.vlgmr.msra.gmra.mxu3 %vm370_vm5, %v1313_v18 }
  0xd7   : > { %548 = vmatpush.msra.mxu0 %v230_v19  ;;  %568 = vmatpush.msra.mxu1 %v231_v20 }
  0xd8   : > { %588 = vmatpush.msra.mxu2 %v232_v21  ;;  %608 = vmatpush.msra.mxu3 %v233_v22  ;;  %v362_v42 = vpop.permute.xlu0 %361 }
  0xd9   : > { %549 = vmatpush.msra.mxu0 %v214_v23  ;;  %569 = vmatpush.msra.mxu1 %v215_v24  ;;  %vm363_vm9 = vcmp.eq.s32.totalorder %v1307_v5, %v362_v42 }
  0xda   : > { %v318_v27 = vpop.permute.xlu1 %317  ;;  %589 = vmatpush.msra.mxu2 %v216_v25  ;;  %609 = vmatpush.msra.mxu3 %v217_v26 }
  0xdb   : > { %vm319_vm6 = vcmp.eq.s32.totalorder %v1307_v5, %v318_v27 }
  0xdc   : > { %v324_v39 = vsel %vm319_vm6, %v322_v28, 0.0 }
  0xdd   : > { %926 = vmatmul.msk.f32.vlgmr.msrb.gmra.mxu0 %vm370_vm5, %v1313_v18  ;;  %927 = vmatmul.msk.f32.vlgmr.msrb.gmra.mxu1 %vm370_vm5, %v1313_v18  ;;  %v325_v44 = vadd.f32 %v324_v39, %v303_v41 }
  0xde   : > { %928 = vmatmul.msk.f32.vlgmr.msrb.gmra.mxu2 %vm370_vm5, %v1313_v18  ;;  %929 = vmatmul.msk.f32.vlgmr.msrb.gmra.mxu3 %vm370_vm5, %v1313_v18 }
  0xdf   : > { %628 = vmatpush.msrb.mxu0 %v234_v29  ;;  %648 = vmatpush.msrb.mxu1 %v235_v30 }
  0xe0   : > { %668 = vmatpush.msrb.mxu2 %v236_v32  ;;  %688 = vmatpush.msrb.mxu3 %v237_v33 }
  0xe1   : > { %629 = vmatpush.msrb.mxu0 %v218_v34  ;;  %649 = vmatpush.msrb.mxu1 %v219_v35 }
  0xe2   : > { %v340_v38 = vpop.permute.xlu1 %339  ;;  %669 = vmatpush.msrb.mxu2 %v220_v36  ;;  %689 = vmatpush.msrb.mxu3 %v221_v37 }
  0xe3   : > { %vm341_vm8 = vcmp.eq.s32.totalorder %v1307_v5, %v340_v38 }
  0xe4   : > { %v346_v43 = vsel %vm341_vm8, %v344_v40, 0.0 }
  0xe5   : > { %930 = vmatmul.msk.f32.vlgmr.msra.gmra.mxu0 %vm370_vm5, %v1313_v18  ;;  %931 = vmatmul.msk.f32.vlgmr.msra.gmra.mxu1 %vm370_vm5, %v1313_v18  ;;  %v347_v45 = vadd.f32 %v346_v43, %v325_v44 }
  0xe6   : > { %932 = vmatmul.msk.f32.vlgmr.msra.gmra.mxu2 %vm370_vm5, %v1313_v18  ;;  %933 = vmatmul.msk.f32.vlgmr.msra.gmra.mxu3 %vm370_vm5, %v1313_v18 }
  0xea   : > { %v366_v46 = vpop.permute.xlu1 %365 }
  0xeb   : > { %v368_v47 = vsel %vm363_vm9, %v366_v46, 0.0 }
  0xec   : > { %v369_v48 = vadd.f32 %v368_v47, %v347_v45 }
  0xed   : > { %934 = vmatmul.msk.f32.vlgmr.msrb.gmra.mxu0 %vm370_vm5, %v1313_v18  ;;  %935 = vmatmul.msk.f32.vlgmr.msrb.gmra.mxu1 %vm370_vm5, %v1313_v18 }
  0xee   : > { %936 = vmatmul.msk.f32.vlgmr.msrb.gmra.mxu2 %vm370_vm5, %v1313_v18  ;;  %937 = vmatmul.msk.f32.vlgmr.msrb.gmra.mxu3 %vm370_vm5, %v1313_v18 }
  0xef   : > { %708 = vperm.xlu1 %1033, %v369_v48   ;;  %702 = vperm.xlu0 %1032, %v369_v48  }
  0xf0   : > { %696 = vperm.xlu2 %1029, %v369_v48  }
  0xf7   : > { %1035 = vset.pattern.permute.xlu1 %v1170_v49  ;;  %1037 = vset.pattern.permute.xlu0 %v1171_v50 }
  0xf8   : > { %1034 = vset.pattern.permute.xlu2 %v1172_v51  ;;  %720 = vperm.xlu1 %1035, %v369_v48  }
  0xf9   : > { %732 = vperm.xlu0 %1037, %v369_v48   ;;  %714 = vperm.xlu2 %1034, %v369_v48  }
 0x100   : > { %1038 = vset.pattern.permute.xlu1 %v1173_v52 }
 0x101   : > { %1042 = vset.pattern.permute.xlu0 %v1174_v53  ;;  %1036 = vset.pattern.permute.xlu2 %v1175_v54 }
 0x102   : > { %738 = vperm.xlu1 %1038, %v369_v48   ;;  %762 = vperm.xlu0 %1042, %v369_v48  }
 0x103   : > { %726 = vperm.xlu2 %1036, %v369_v48  }
 0x10a   : > { %1040 = vset.pattern.permute.xlu1 %v1176_v55  ;;  %1047 = vset.pattern.permute.xlu0 %v1177_v56 }
 0x10b   : > { %1039 = vset.pattern.permute.xlu2 %v1178_v57  ;;  %750 = vperm.xlu1 %1040, %v369_v48  }
 0x10c   : > { %744 = vperm.xlu2 %1039, %v369_v48  }
 0x113   : > { %1043 = vset.pattern.permute.xlu1 %v1179_v58 }
 0x114   : > { %1041 = vset.pattern.permute.xlu2 %v1180_v59  ;;  %768 = vperm.xlu1 %1043, %v369_v48  }
 0x115   : > { %756 = vperm.xlu2 %1041, %v369_v48  }
 0x11c   : > { %1045 = vset.pattern.permute.xlu1 %v1181_v60 }
 0x11d   : > { %1044 = vset.pattern.permute.xlu2 %v1182_v61  ;;  %780 = vperm.xlu1 %1045, %v369_v48  }
 0x11e   : > { %774 = vperm.xlu2 %1044, %v369_v48  }
 0x126   : > { %1046 = vset.pattern.permute.xlu2 %v1177_v56 }
 0x127   : > { %786 = vperm.xlu2 %1046, %v369_v48  }
 0x14a   : > { %v697_v62 = vpop.permute.xlu2 %696 }
 0x152   : > { %v391_v2 = vpop.f32.mrf.mxu0  ;;  %v411_v3 = vpop.f32.mrf.mxu1 }
 0x153   : > { %v715_v63 = vpop.permute.xlu2 %714  ;;  %v699_v5 = vmul.f32 %v697_v62, %v391_v2 }
 0x159   : > { %v431_v8 = vpop.f32.mrf.mxu2  ;;  %v451_v10 = vpop.f32.mrf.mxu3 }
 0x15a   : > { %v471_v13 = vpop.f32.mrf.mxu0  ;;  %v717_v14 = vmul.f32 %v715_v63, %v451_v10  ;;  %v491_v17 = vpop.f32.mrf.mxu1 }
 0x15d   : > { %v727_v6 = vpop.permute.xlu2 %726 }
 0x15e   : > { %v729_v20 = vmul.f32 %v727_v6, %v491_v17 }
 0x161   : > { %v709_v0 = vpop.permute.xlu1 %708  ;;  %v703_v1 = vpop.permute.xlu0 %702 }
 0x162   : > { %v705_v4 = vmul.f32 %v703_v1, %v411_v3  ;;  %v711_v9 = vmul.f32 %v709_v0, %v431_v8  ;;  %v511_v24 = vpop.f32.mrf.mxu2  ;;  %v531_v25 = vpop.f32.mrf.mxu3 }
 0x163   : > { %v551_v29 = vpop.f32.mrf.mxu0  ;;  %v571_v32 = vpop.f32.mrf.mxu1 }
 0x164   : > { %v706_v7 = vadd.f32 %v705_v4, %v699_v5 }
 0x166   : > { %v712_v12 = vadd.f32 %v711_v9, %v706_v7  ;;  %v745_v18 = vpop.permute.xlu2 %744 }
 0x167   : > { %v747_v34 = vmul.f32 %v745_v18, %v551_v29 }
 0x168   : > { %v718_v16 = vadd.f32 %v717_v14, %v712_v12 }
 0x16a   : > { %v721_v11 = vpop.permute.xlu1 %720  ;;  %v591_v38 = vpop.f32.mrf.mxu2 }
 0x16b   : > { %v723_v15 = vmul.f32 %v721_v11, %v471_v13  ;;  %v733_v22 = vpop.permute.xlu0 %732  ;;  %v611_v44 = vpop.f32.mrf.mxu3 }
 0x16c   : > { %v735_v26 = vmul.f32 %v733_v22, %v511_v24  ;;  %v631_v45 = vpop.f32.mrf.mxu0  ;;  %v651_v50 = vpop.f32.mrf.mxu1 }
 0x16d   : > { %v724_v19 = vadd.f32 %v723_v15, %v718_v16 }
 0x16f   : > { %v730_v23 = vadd.f32 %v729_v20, %v724_v19  ;;  %v757_v30 = vpop.permute.xlu2 %756 }
 0x170   : > { %v759_v39 = vmul.f32 %v757_v30, %v591_v38 }
 0x171   : > { %v736_v28 = vadd.f32 %v735_v26, %v730_v23 }
 0x172   : > { %v671_v51 = vpop.f32.mrf.mxu2 }
 0x173   : > { %v691_v57 = vpop.f32.mrf.mxu3 }
 0x174   : > { %v739_v21 = vpop.permute.xlu1 %738  ;;  %v763_v40 = vpop.permute.xlu0 %762 }
 0x175   : > { %v741_v27 = vmul.f32 %v739_v21, %v531_v25  ;;  %v765_v46 = vmul.f32 %v763_v40, %v611_v44 }
 0x177   : > { %v742_v31 = vadd.f32 %v741_v27, %v736_v28 }
 0x178   : > { %v775_v41 = vpop.permute.xlu2 %774 }
 0x179   : > { %v748_v36 = vadd.f32 %v747_v34, %v742_v31  ;;  %v777_v52 = vmul.f32 %v775_v41, %v651_v50 }
 0x17d   : > { %v751_v33 = vpop.permute.xlu1 %750 }
 0x17e   : > { %v753_v35 = vmul.f32 %v751_v33, %v571_v32 }
 0x180   : > { %v754_v37 = vadd.f32 %v753_v35, %v748_v36 }
 0x181   : > { %v787_v53 = vpop.permute.xlu2 %786 }
 0x182   : > { %v760_v42 = vadd.f32 %v759_v39, %v754_v37  ;;  %v789_v58 = vmul.f32 %v787_v53, %v691_v57 }
 0x184   : > { %v766_v48 = vadd.f32 %v765_v46, %v760_v42 }
 0x186   : > { %v769_v43 = vpop.permute.xlu1 %768 }
 0x187   : > { %v771_v47 = vmul.f32 %v769_v43, %v631_v45 }
 0x189   : > { %v772_v49 = vadd.f32 %v771_v47, %v766_v48 }
 0x18b   : > { %v778_v55 = vadd.f32 %v777_v52, %v772_v49 }
 0x18f   : > { %v781_v54 = vpop.permute.xlu1 %780 }
 0x190   : > { %v783_v56 = vmul.f32 %v781_v54, %v671_v51 }
 0x192   : > { %v784_v59 = vadd.f32 %v783_v56, %v778_v55 }
 0x194   : > { %v790_v60 = vadd.f32 %v789_v58, %v784_v59 }
 0x196   : > { %791 = vst [vmem:[%s198_s5] sm:$0xff] %v790_v60 }
 0x197   : > { %1107 = shalt.err (!%p1104_p0)
}
 0x198   : > { %947 = dma.vmem_to_hbm [thread:$0]  (%p1249_p9), %s807_s6, 128, %s809_s7, %s793_s12  }
 0x199 PF: > { %s820_s15 = sand.u32 1, %s1142_s9   ;;  %p954_p1 = pnand %p906_p12, %p1256_p11 }
 0x19a   : > { %s821_s21 = scalar_lea.sflag [#allocation4], %s820_s15 }
 0x19b   : > { %p955_p2 = pneg %p954_p1 }
 0x19d   : > { %1137 = dma.done.wait (%p955_p2), %s821_s21, 128  }
 0x19e   : > { %1139 = vsyncadd (%p955_p2), %s821_s21, 4294967168  ;;  %s18_s14 = sadd.s32 1, %s1162_s14   ;;  %s1413_s9 = smov %s1146_s10 }
 0x19f   : > { %p15_p3 = scmp.ge.s32.totalorder %s18_s14, 4   ;;  %s1414_s10 = smov %s1150_s11 }
 0x1a0   : > { %s1415_s11 = smov %s1254_s23  ;;  %s1416_s12 = smov %s1158_s13 }
 0x1a1   : > { %s1417_s13 = smov %s1419_s17  ;;  %17 = sbr.rel (!%p15_p3) target bundleno = 6 (0x6), region = 76 }
 0x1a6   :  { %827 = vsyncpa [#allocation3], 1 }
 0x1a7   :  { %829 = vsyncpa [#allocation3 + $0x1], 1 }
 0x1a8   :  { %830 = vsyncpa [#allocation4], 1 }
 0x1a9   :  { %832 = vsyncpa [#allocation4 + $0x1], 1 }

</bundles_post_ra>
